<compile_context>
chip_gen: v7x
topology: tpu7x:2x2x1
jax: 0.10.0
libtpu: 0.0.40
codegen_flags: <defaults>
</compile_context>

<pallas_src>
import jax
import jax.numpy as jnp
from jax.experimental import pallas as pl
from jax.experimental.pallas import tpu as pltpu

H1 = 32          # n_hidden_neurons1
H2 = 32          # n_hidden_neurons2
LANES = 128      # TPU lane width
MAX_TB = 512     # max batch tile along the lane axis (multiple of 128)


def _round_up(a, m):
    return ((a + m - 1) // m) * m


def _sigmoid(z):
    # exp lands on the EUP; approx reciprocal is also an EUP op -> essentially
    # free filler, VALU slot stays clear.
    return pl.reciprocal(1.0 + jnp.exp(-z), approx=True)


def _mlp_kernel(x_ref, w1_ref, b1_ref, w2_ref, b2_ref, w3_ref, b3_ref,
                w4t_ref, b4_ref, o_ref):
    x = x_ref[...]                                                # (1, TB)

    # fc1: in_features == 1 -> broadcast outer product on the VPU.
    h1 = _sigmoid(w1_ref[...] * x + b1_ref[...])                  # (H1, TB)

    # fc2 / fc3: 32x32 weights on the MXU, batch on the lane axis (N = TB).
    h2 = _sigmoid(jnp.dot(w2_ref[...], h1,
                          preferred_element_type=jnp.float32) + b2_ref[...])
    h3 = _sigmoid(jnp.dot(w3_ref[...], h2,
                          preferred_element_type=jnp.float32) + b3_ref[...])

    # fc4: out_features == 1 -> 32-deep sublane reduction, not a sliver matmul.
    out = jnp.sum(w4t_ref[...] * h3, axis=0, keepdims=True) + b4_ref[...]
    o_ref[...] = out.astype(o_ref.dtype)                          # (1, TB)


@jax.jit
def mlp_forward(x, params):
    """x: (N, 1) float32 -> (N, 1) float32 (PyTorch Net.forward semantics)."""
    w1, b1 = params["w1"], params["b1"]          # (H1, 1), (H1, 1)
    w2, b2 = params["w2"], params["b2"]          # (H2, H1), (H2, 1)
    w3, b3 = params["w3"], params["b3"]          # (H2, H2), (H2, 1)
    w4t, b4 = params["w4t"], params["b4"]        # (H2, 1),  (1, 1)

    n = x.shape[0]
    tb = min(MAX_TB, _round_up(n, LANES))        # lane-aligned batch tile
    n_pad = _round_up(n, tb)

    # Feature-major: put the batch on the lane (last) axis, pad to tile size.
    x_t = jnp.pad(x.T, ((0, 0), (0, n_pad - n)))                  # (1, n_pad)

    rep = lambda i: (0, 0)   # weights / biases replicated across the batch grid
    out = pl.pallas_call(
        _mlp_kernel,
        out_shape=jax.ShapeDtypeStruct((1, n_pad), jnp.float32),
        grid_spec=pl.GridSpec(
            grid=(n_pad // tb,),
            in_specs=[
                pl.BlockSpec((1, tb), lambda i: (0, i)),   # x tile (1, TB)
                pl.BlockSpec((H1, 1), rep),                # w1
                pl.BlockSpec((H1, 1), rep),                # b1
                pl.BlockSpec((H2, H1), rep),               # w2
                pl.BlockSpec((H2, 1), rep),                # b2
                pl.BlockSpec((H2, H2), rep),               # w3
                pl.BlockSpec((H2, 1), rep),                # b3
                pl.BlockSpec((H2, 1), rep),                # w4 (transposed)
                pl.BlockSpec((1, 1), rep),                 # b4
            ],
            out_specs=pl.BlockSpec((1, tb), lambda i: (0, i)),
        ),
        compiler_params=pltpu.CompilerParams(
            dimension_semantics=("parallel",),     # shard batch over TCs (v7x)
            vmem_limit_bytes=32 * 1024 * 1024,     # explicit cap; safe on v7x
        ),
    )(x_t, w1, b1, w2, b2, w3, b3, w4t, b4)

    return out[:, :n].T                                           # (N, 1)


def init_params(key):
    """Deterministic init mimicking torch.nn.Linear (U(-1/sqrt(fan_in), +))."""
    ks = jax.random.split(key, 8)

    def lin(kw, kb, fan_in, fan_out):
        bound = 1.0 / jnp.sqrt(jnp.float32(fan_in))
        # (out_features, in_features), PyTorch orientation.
        w = jax.random.uniform(kw, (fan_out, fan_in), jnp.float32, -bound, bound)
        b = jax.random.uniform(kb, (fan_out, 1), jnp.float32, -bound, bound)
        return w, b

    w1, b1 = lin(ks[0], ks[1], 1, H1)            # (H1, 1), (H1, 1)
    w2, b2 = lin(ks[2], ks[3], H1, H2)           # (H2, H1), (H2, 1)
    w3, b3 = lin(ks[4], ks[5], H2, H2)           # (H2, H2), (H2, 1)
    w4, b4 = lin(ks[6], ks[7], H2, 1)            # (1, H2), (1, 1)
    return dict(w1=w1, b1=b1, w2=w2, b2=b2, w3=w3, b3=b3,
                w4t=w4.T, b4=b4)                 # store fc4 weight as (H2, 1)


def reference_forward(x, p):
    # Batch-major pure-JAX reference with exact sigmoid.
    h = jax.nn.sigmoid(x @ p["w1"].T + p["b1"].T)     # (N, H1)
    h = jax.nn.sigmoid(h @ p["w2"].T + p["b2"].T)     # (N, H2)
    h = jax.nn.sigmoid(h @ p["w3"].T + p["b3"].T)     # (N, H2)
    return h @ p["w4t"] + p["b4"].T                   # (N, 1)


if __name__ == "__main__":
    key = jax.random.PRNGKey(0)
    kx1, kx2, kp = jax.random.split(key, 3)
    params = init_params(kp)

    # Small batch (single tile) and a multi-tile batch (exercises grid > 1).
    for n, kk in ((8, kx1), (1000, kx2)):
        x = jax.random.normal(kk, (n, 1), jnp.float32)
        y = mlp_forward(x, params)
        jax.block_until_ready(y)

        y_ref = reference_forward(x, params)
        assert y.shape == (n, 1)
        # Tolerance accounts for the EUP approx-reciprocal in the sigmoid.
        assert jnp.allclose(y, y_ref, atol=5e-3, rtol=5e-3), (
            float(jnp.max(jnp.abs(y - y_ref))))

    print("KERNEL_OK")
</pallas_src>

<mosaic_0001>
module attributes {stable_mosaic.version = 11 : i64} {
  func.func @_mlp_kernel(%arg0: i32, %arg1: memref<1x128xf32, #tpu.memory_space<vmem>>, %arg2: memref<32x1xf32, #tpu.memory_space<vmem>>, %arg3: memref<32x1xf32, #tpu.memory_space<vmem>>, %arg4: memref<32x32xf32, #tpu.memory_space<vmem>>, %arg5: memref<32x1xf32, #tpu.memory_space<vmem>>, %arg6: memref<32x32xf32, #tpu.memory_space<vmem>>, %arg7: memref<32x1xf32, #tpu.memory_space<vmem>>, %arg8: memref<32x1xf32, #tpu.memory_space<vmem>>, %arg9: memref<1x1xf32, #tpu.memory_space<vmem>>, %arg10: memref<1x128xf32, #tpu.memory_space<vmem>>) attributes {dimension_semantics = [#tpu.dimension_semantics<parallel>], iteration_bounds = array<i64: 1>, scalar_prefetch = 0 : i64, scratch_operands = 0 : i64, tpu.core_type = #tpu.core_type<tc>, window_params = [{transform_indices = @transform_0, window_bounds = array<i64: 1, 128>}, {pipeline_mode = #tpu.pipeline_mode<synchronous>, transform_indices = @transform_1, window_bounds = array<i64: 32, 1>}, {pipeline_mode = #tpu.pipeline_mode<synchronous>, transform_indices = @transform_2, window_bounds = array<i64: 32, 1>}, {pipeline_mode = #tpu.pipeline_mode<synchronous>, transform_indices = @transform_3, window_bounds = array<i64: 32, 32>}, {pipeline_mode = #tpu.pipeline_mode<synchronous>, transform_indices = @transform_4, window_bounds = array<i64: 32, 1>}, {pipeline_mode = #tpu.pipeline_mode<synchronous>, transform_indices = @transform_5, window_bounds = array<i64: 32, 32>}, {pipeline_mode = #tpu.pipeline_mode<synchronous>, transform_indices = @transform_6, window_bounds = array<i64: 32, 1>}, {pipeline_mode = #tpu.pipeline_mode<synchronous>, transform_indices = @transform_7, window_bounds = array<i64: 32, 1>}, {pipeline_mode = #tpu.pipeline_mode<synchronous>, transform_indices = @transform_8, window_bounds = array<i64: 1, 1>}, {transform_indices = @transform_9, window_bounds = array<i64: 1, 128>}]} {
    %c0 = arith.constant 0 : index
    %c0_0 = arith.constant 0 : index
    %0 = vector.load %arg1[%c0, %c0_0] : memref<1x128xf32, #tpu.memory_space<vmem>>, vector<1x128xf32>
    %c0_1 = arith.constant 0 : index
    %c0_2 = arith.constant 0 : index
    %1 = vector.load %arg2[%c0_1, %c0_2] : memref<32x1xf32, #tpu.memory_space<vmem>>, vector<32x1xf32>
    %2 = vector.broadcast %1 : vector<32x1xf32> to vector<32x128xf32>
    %3 = vector.broadcast %0 : vector<1x128xf32> to vector<32x128xf32>
    %4 = arith.mulf %2, %3 : vector<32x128xf32>
    %c0_3 = arith.constant 0 : index
    %c0_4 = arith.constant 0 : index
    %5 = vector.load %arg3[%c0_3, %c0_4] : memref<32x1xf32, #tpu.memory_space<vmem>>, vector<32x1xf32>
    %6 = vector.broadcast %5 : vector<32x1xf32> to vector<32x128xf32>
    %7 = arith.addf %4, %6 : vector<32x128xf32>
    %cst = arith.constant 0.000000e+00 : f32
    %8 = vector.broadcast %cst : f32 to vector<32x128xf32>
    %9 = arith.subf %8, %7 : vector<32x128xf32>
    %10 = math.exp %9 : vector<32x128xf32>
    %cst_5 = arith.constant 1.000000e+00 : f32
    %11 = vector.broadcast %cst_5 : f32 to vector<32x128xf32>
    %12 = arith.addf %11, %10 : vector<32x128xf32>
    %13 = tpu.reciprocal %12 {approx = true} : vector<32x128xf32> -> vector<32x128xf32>
    %c0_6 = arith.constant 0 : index
    %c0_7 = arith.constant 0 : index
    %14 = vector.load %arg4[%c0_6, %c0_7] : memref<32x32xf32, #tpu.memory_space<vmem>>, vector<32x32xf32>
    %cst_8 = arith.constant dense<0.000000e+00> : vector<32x128xf32>
    %15 = tpu.matmul %14, %13, %cst_8 {dimension_numbers = #tpu.dot_dimension_numbers<[1], [0], [0], [1], [0, 0, 1, 1], [], []>} : vector<32x32xf32>, vector<32x128xf32>, vector<32x128xf32> -> vector<32x128xf32>
    %c0_9 = arith.constant 0 : index
    %c0_10 = arith.constant 0 : index
    %16 = vector.load %arg5[%c0_9, %c0_10] : memref<32x1xf32, #tpu.memory_space<vmem>>, vector<32x1xf32>
    %17 = vector.broadcast %16 : vector<32x1xf32> to vector<32x128xf32>
    %18 = arith.addf %15, %17 : vector<32x128xf32>
    %cst_11 = arith.constant 0.000000e+00 : f32
    %19 = vector.broadcast %cst_11 : f32 to vector<32x128xf32>
    %20 = arith.subf %19, %18 : vector<32x128xf32>
    %21 = math.exp %20 : vector<32x128xf32>
    %cst_12 = arith.constant 1.000000e+00 : f32
    %22 = vector.broadcast %cst_12 : f32 to vector<32x128xf32>
    %23 = arith.addf %22, %21 : vector<32x128xf32>
    %24 = tpu.reciprocal %23 {approx = true} : vector<32x128xf32> -> vector<32x128xf32>
    %c0_13 = arith.constant 0 : index
    %c0_14 = arith.constant 0 : index
    %25 = vector.load %arg6[%c0_13, %c0_14] : memref<32x32xf32, #tpu.memory_space<vmem>>, vector<32x32xf32>
    %cst_15 = arith.constant dense<0.000000e+00> : vector<32x128xf32>
    %26 = tpu.matmul %25, %24, %cst_15 {dimension_numbers = #tpu.dot_dimension_numbers<[1], [0], [0], [1], [0, 0, 1, 1], [], []>} : vector<32x32xf32>, vector<32x128xf32>, vector<32x128xf32> -> vector<32x128xf32>
    %c0_16 = arith.constant 0 : index
    %c0_17 = arith.constant 0 : index
    %27 = vector.load %arg7[%c0_16, %c0_17] : memref<32x1xf32, #tpu.memory_space<vmem>>, vector<32x1xf32>
    %28 = vector.broadcast %27 : vector<32x1xf32> to vector<32x128xf32>
    %29 = arith.addf %26, %28 : vector<32x128xf32>
    %cst_18 = arith.constant 0.000000e+00 : f32
    %30 = vector.broadcast %cst_18 : f32 to vector<32x128xf32>
    %31 = arith.subf %30, %29 : vector<32x128xf32>
    %32 = math.exp %31 : vector<32x128xf32>
    %cst_19 = arith.constant 1.000000e+00 : f32
    %33 = vector.broadcast %cst_19 : f32 to vector<32x128xf32>
    %34 = arith.addf %33, %32 : vector<32x128xf32>
    %35 = tpu.reciprocal %34 {approx = true} : vector<32x128xf32> -> vector<32x128xf32>
    %c0_20 = arith.constant 0 : index
    %c0_21 = arith.constant 0 : index
    %36 = vector.load %arg8[%c0_20, %c0_21] : memref<32x1xf32, #tpu.memory_space<vmem>>, vector<32x1xf32>
    %37 = vector.broadcast %36 : vector<32x1xf32> to vector<32x128xf32>
    %38 = arith.mulf %37, %35 : vector<32x128xf32>
    %cst_22 = arith.constant dense<0.000000e+00> : vector<128xf32>
    %39 = vector.multi_reduction <add>, %38, %cst_22 [0] : vector<32x128xf32> to vector<128xf32>
    %40 = vector.shape_cast %39 : vector<128xf32> to vector<1x128xf32>
    %c0_23 = arith.constant 0 : index
    %c0_24 = arith.constant 0 : index
    %41 = vector.load %arg9[%c0_23, %c0_24] : memref<1x1xf32, #tpu.memory_space<vmem>>, vector<1x1xf32>
    %42 = vector.broadcast %41 : vector<1x1xf32> to vector<1x128xf32>
    %43 = arith.addf %40, %42 : vector<1x128xf32>
    %c0_25 = arith.constant 0 : index
    %c0_26 = arith.constant 0 : index
    %44 = vector.load %arg10[%c0_25, %c0_26] : memref<1x128xf32, #tpu.memory_space<vmem>>, vector<1x128xf32>
    tpu.vector_store %arg10[%c0_25, %c0_26], %43 {strides = array<i32>} : memref<1x128xf32, #tpu.memory_space<vmem>>, vector<1x128xf32>,
    return
  }
  func.func @transform_0(%arg0: i32) -> (i32, i32) {
    %c0_i32 = arith.constant 0 : i32
    %c0_i32_0 = arith.constant 0 : i32
    return %c0_i32, %arg0 : i32, i32
  }
  func.func @transform_1(%arg0: i32) -> (i32, i32) {
    %c0_i32 = arith.constant 0 : i32
    %c0_i32_0 = arith.constant 0 : i32
    %c0_i32_1 = arith.constant 0 : i32
    return %c0_i32, %c0_i32_0 : i32, i32
  }
  func.func @transform_2(%arg0: i32) -> (i32, i32) {
    %c0_i32 = arith.constant 0 : i32
    %c0_i32_0 = arith.constant 0 : i32
    %c0_i32_1 = arith.constant 0 : i32
    return %c0_i32, %c0_i32_0 : i32, i32
  }
  func.func @transform_3(%arg0: i32) -> (i32, i32) {
    %c0_i32 = arith.constant 0 : i32
    %c0_i32_0 = arith.constant 0 : i32
    %c0_i32_1 = arith.constant 0 : i32
    return %c0_i32, %c0_i32_0 : i32, i32
  }
  func.func @transform_4(%arg0: i32) -> (i32, i32) {
    %c0_i32 = arith.constant 0 : i32
    %c0_i32_0 = arith.constant 0 : i32
    %c0_i32_1 = arith.constant 0 : i32
    return %c0_i32, %c0_i32_0 : i32, i32
  }
  func.func @transform_5(%arg0: i32) -> (i32, i32) {
    %c0_i32 = arith.constant 0 : i32
    %c0_i32_0 = arith.constant 0 : i32
    %c0_i32_1 = arith.constant 0 : i32
    return %c0_i32, %c0_i32_0 : i32, i32
  }
  func.func @transform_6(%arg0: i32) -> (i32, i32) {
    %c0_i32 = arith.constant 0 : i32
    %c0_i32_0 = arith.constant 0 : i32
    %c0_i32_1 = arith.constant 0 : i32
    return %c0_i32, %c0_i32_0 : i32, i32
  }
  func.func @transform_7(%arg0: i32) -> (i32, i32) {
    %c0_i32 = arith.constant 0 : i32
    %c0_i32_0 = arith.constant 0 : i32
    %c0_i32_1 = arith.constant 0 : i32
    return %c0_i32, %c0_i32_0 : i32, i32
  }
  func.func @transform_8(%arg0: i32) -> (i32, i32) {
    %c0_i32 = arith.constant 0 : i32
    %c0_i32_0 = arith.constant 0 : i32
    %c0_i32_1 = arith.constant 0 : i32
    return %c0_i32, %c0_i32_0 : i32, i32
  }
  func.func @transform_9(%arg0: i32) -> (i32, i32) {
    %c0_i32 = arith.constant 0 : i32
    %c0_i32_0 = arith.constant 0 : i32
    return %c0_i32, %arg0 : i32, i32
  }
}

</mosaic_0001>

<bundles_post_ra>
// kernel: mlp_forward.1
= control target key start
LH: loop header
LB: loop body
LE: loop exit
PB: predicated region body
PF: predicated region fallthrough
CT: control target
= control target key end

     0   :  { %v581_v0 = vmov 0   ;;  %vm145_vm0 = vcmask 261120   ;;  %s733_s2 = inlined_call_operand.vmem [shape: f32[32,1], index: 2, kind: input, shape index: {}]   ;;  %s734_s1 = inlined_call_operand.vmem [shape: f32[32,1], index: 1, kind: input, shape index: {}]   ;;  %s735_s8 = inlined_call_operand.<no memory space> [shape: f32[1,1], index: 8, kind: input, shape index: {}]   ;;  %s736_s4 = inlined_call_operand.vmem [shape: f32[32,1], index: 4, kind: input, shape index: {}]   ;;  %s737_s6 = inlined_call_operand.vmem [shape: f32[32,1], index: 6, kind: input, shape index: {}]   ;;  %s738_s7 = inlined_call_operand.vmem [shape: f32[32,1], index: 7, kind: input, shape index: {}]   ;;  %s739_s3 = inlined_call_operand.vmem [shape: f32[32,32], index: 3, kind: input, shape index: {}]   ;;  %s740_s0 = inlined_call_operand.vmem [shape: f32[1,128], index: 0, kind: input, shape index: {}]   ;;  %s741_s5 = inlined_call_operand.vmem [shape: f32[32,32], index: 5, kind: input, shape index: {}]   ;;  %s742_s9 = inlined_call_operand.vmem [shape: f32[1,128], index: 9, kind: output, shape index: {}]  }
   0x1   :  { %532 = vset.pattern.permute.xlu1 %v581_v0  ;;  %531 = vset.pattern.permute.xlu0 %v581_v0  ;;  %v69_v1 = vld [vmem:[%s733_s2] sm:$0xff]  ;;  %v14_v3 = vstv %s735_s8  ;;  %v70_v4 = vld [vmem:[%s733_s2 + $0x8] sm:$0xff]  ;;  %v38_v6 = vld [vmem:[%s734_s1 + $0x18] sm:$0xff] }
   0x2   :  { %v35_v2 = vld [vmem:[%s734_s1] sm:$0xff]  ;;  %75 = vperm.xlu1 %532, %v69_v1   ;;  %15 = vst [vmem:[#allocation2] sm:$0x1] %v14_v3  ;;  %v36_v5 = vld [vmem:[%s734_s1 + $0x8] sm:$0xff]  ;;  %v37_v7 = vld [vmem:[%s734_s1 + $0x10] sm:$0xff] }
   0x3   :  { %41 = vperm.xlu0 %531, %v35_v2   ;;  %v72_v8 = vld [vmem:[%s733_s2 + $0x18] sm:$0xff]  ;;  %v71_v9 = vld [vmem:[%s733_s2 + $0x10] sm:$0xff]  ;;  %v122_v10 = vld [vmem:[%s736_s4 + $0x8] sm:$0xff] }
   0x4   :  { %v121_v11 = vld [vmem:[%s736_s4] sm:$0xff]  ;;  %v124_v12 = vld [vmem:[%s736_s4 + $0x18] sm:$0xff]  ;;  %v123_v13 = vld [vmem:[%s736_s4 + $0x10] sm:$0xff] }
   0x5   :  { %v268_v14 = vld [vmem:[%s737_s6 + $0x8] sm:$0xff]  ;;  %v267_v15 = vld [vmem:[%s737_s6] sm:$0xff]  ;;  %v270_v16 = vld [vmem:[%s737_s6 + $0x18] sm:$0xff] }
   0x6   :  { %80 = vperm.xlu1 %532, %v70_v4   ;;  %v269_v17 = vld [vmem:[%s737_s6 + $0x10] sm:$0xff]  ;;  %v409_v18 = vld [vmem:[%s738_s7 + $0x8] sm:$0xff]  ;;  %v408_v19 = vld [vmem:[%s738_s7] sm:$0xff] }
   0x7   :  { %46 = vperm.xlu0 %531, %v36_v5   ;;  %v411_v20 = vld [vmem:[%s738_s7 + $0x18] sm:$0xff]  ;;  %v410_v21 = vld [vmem:[%s738_s7 + $0x10] sm:$0xff]  ;;  %v117_v23 = vld [vmem:[%s739_s3] sm:$0xff] }
   0x8   :  { %494 = vmatprep.mubr.msk.f32.mxu0 %vm145_vm0, %v117_v23  ;;  %v461_v24 = vld [vmem:[%s740_s0] ss:$0 sm:$0xff]  ;;  %v118_v63 = vld [vmem:[%s739_s3 + $0x8] sm:$0xff]  ;;  %v119_v0 = vld [vmem:[%s739_s3 + $0x10] sm:$0xff] }
   0x9   :  { %v445_v22 = vld [vmem:[#allocation2] sm:$0x1]  ;;  %v120_v1 = vld [vmem:[%s739_s3 + $0x18] sm:$0xff] }
   0xa   :  { %56 = vperm.xlu1 %532, %v38_v6   ;;  %v263_v2 = vld [vmem:[%s741_s5] sm:$0xff] }
   0xb   :  { %51 = vperm.xlu0 %531, %v37_v7   ;;  %508 = vmatprep.mubr.msk.f32.mxu1 %vm145_vm0, %v263_v2 }
   0xe   :  { %90 = vperm.xlu1 %532, %v72_v8  }
   0xf   :  { %85 = vperm.xlu0 %531, %v71_v9  }
  0x12   :  { %132 = vperm.xlu1 %532, %v122_v10  }
  0x13   :  { %127 = vperm.xlu0 %531, %v121_v11  }
  0x16   :  { %142 = vperm.xlu1 %532, %v124_v12  }
  0x17   :  { %137 = vperm.xlu0 %531, %v123_v13  }
  0x1a   :  { %278 = vperm.xlu1 %532, %v268_v14  }
  0x1b   :  { %273 = vperm.xlu0 %531, %v267_v15  }
  0x1e   :  { %288 = vperm.xlu1 %532, %v270_v16  }
  0x1f   :  { %283 = vperm.xlu0 %531, %v269_v17  }
  0x22   :  { %419 = vperm.xlu1 %532, %v409_v18  }
  0x23   :  { %414 = vperm.xlu0 %531, %v408_v19  }
  0x26   :  { %429 = vperm.xlu1 %532, %v411_v20  }
  0x27   :  { %424 = vperm.xlu0 %531, %v410_v21  }
  0x2b   :  { %448 = vperm.xlu0 %531, %v445_v22  }
  0x81   :  { %v76_v25 = vpop.permute.xlu1 %75 }
  0x82   :  { %v42_v26 = vpop.permute.xlu0 %41 }
  0x83   :  { %v65_v27 = vmul.f32 %v461_v24, %v42_v26 }
  0x85   :  { %v93_v28 = vadd.f32 %v76_v25, %v65_v27  ;;  %v81_v29 = vpop.permute.xlu1 %80 }
  0x86   :  { %v47_v30 = vpop.permute.xlu0 %46 }
  0x87   :  { %v97_v31 = vsub.f32 0.0, %v93_v28  ;;  %v66_v32 = vmul.f32 %v461_v24, %v47_v30 }
  0x89   :  { %v101_v33 = vmul.f32 1.442695, %v97_v31  ;;  %v94_v34 = vadd.f32 %v81_v29, %v66_v32  ;;  %v57_v35 = vpop.permute.xlu1 %56 }
  0x8a   :  { %v52_v36 = vpop.permute.xlu0 %51  ;;  %v68_v39 = vmul.f32 %v461_v24, %v57_v35 }
  0x8b   :  { %533 = vpow2.f32 %v101_v33  ;;  %v98_v37 = vsub.f32 0.0, %v94_v34  ;;  %v67_v40 = vmul.f32 %v461_v24, %v52_v36 }
  0x8d   :  { %v103_v38 = vmul.f32 1.442695, %v98_v37  ;;  %v91_v41 = vpop.permute.xlu1 %90  ;;  %v264_v37 = vld [vmem:[%s741_s5 + $0x8] sm:$0xff] }
  0x8e   :  { %v86_v42 = vpop.permute.xlu0 %85  ;;  %v96_v43 = vadd.f32 %v91_v41, %v68_v39  ;;  %v266_v39 = vld [vmem:[%s741_s5 + $0x18] sm:$0xff] }
  0x8f   :  { %535 = vpow2.f32 %v103_v38  ;;  %v95_v44 = vadd.f32 %v86_v42, %v67_v40  ;;  %v265_v38 = vld [vmem:[%s741_s5 + $0x10] sm:$0xff] }
  0x90   :  { %v100_v45 = vsub.f32 0.0, %v96_v43 }
  0x91   :  { %v99_v46 = vsub.f32 0.0, %v95_v44  ;;  %v133_v3 = vpop.permute.xlu1 %132 }
  0x92   :  { %v107_v47 = vmul.f32 1.442695, %v100_v45  ;;  %v128_v4 = vpop.permute.xlu0 %127 }
  0x93   :  { %v105_v48 = vmul.f32 1.442695, %v99_v46 }
  0x94   :  { %537 = vpow2.f32 %v107_v47 }
  0x95   :  { %v534_v49 = vpop.eup %533  ;;  %539 = vpow2.f32 %v105_v48  ;;  %v143_v10 = vpop.permute.xlu1 %142 }
  0x96   :  { %v109_v50 = vadd.f32 1.0, %v534_v49  ;;  %v138_v13 = vpop.permute.xlu0 %137 }
  0x98   :  { %541 = vrcp.f32 %v109_v50 }
  0x99   :  { %v536_v51 = vpop.eup %535  ;;  %v279_v40 = vpop.permute.xlu1 %278 }
  0x9a   :  { %v110_v52 = vadd.f32 1.0, %v536_v51  ;;  %v274_v41 = vpop.permute.xlu0 %273 }
  0x9c   :  { %543 = vrcp.f32 %v110_v52 }
  0x9d   :  { %v289_v47 = vpop.permute.xlu1 %288 }
  0x9e   :  { %v538_v53 = vpop.eup %537  ;;  %v284_v50 = vpop.permute.xlu0 %283 }
  0x9f   :  { %v540_v54 = vpop.eup %539  ;;  %v112_v55 = vadd.f32 1.0, %v538_v53 }
  0xa0   :  { %v111_v56 = vadd.f32 1.0, %v540_v54 }
  0xa1   :  { %545 = vrcp.f32 %v112_v55 }
  0xa2   :  { %547 = vrcp.f32 %v111_v56  ;;  %v542_v57 = vpop.eup %541 }
  0xa6   :  { %v544_v58 = vpop.eup %543 }
  0xa7   :  { %v514_v59 = vpack.c.bf16 %v544_v58, %v542_v57 }
  0xa9   :  { %515 = vmatprep.subr.bf16.mxu0 %v514_v59 }
  0xaa   :  { %517 = vmatpush3.bf16.msra.mxu0 %v514_v59 }
  0xab   :  { %v546_v60 = vpop.eup %545 }
  0xac   :  { %v548_v61 = vpop.eup %547 }
  0xad   :  { %v518_v62 = vpack.c.bf16 %v546_v60, %v548_v61 }
  0xaf   :  { %519 = vmatprep.subr.bf16.mxu0 %v518_v62 }
  0xb0   :  { %521 = vmatpush3.bf16.msra.mxu0 %v518_v62 }
  0xb3   :  { %495 = vmatmul.mubr.msk.f32.vlgmr.msra.gmra.mrb[0].mxu0 %vm145_vm0, %v118_v63 }
  0xb4   :  { %497 = vmatprep.mubr.msk.f32.mxu0 %vm145_vm0, %v119_v0 }
  0xb7   :  { %498 = vmatmul.mubr.msk.f32.gmra.mrb[2].mxu0 %vm145_vm0, %v120_v1 }
 0x186   :  { %v496_v5 = vpop.f32.mrb[0].mxu0 }
 0x187   :  { %v230_v6 = vadd.f32 %v496_v5, %v133_v3  ;;  %v224_v7 = vpop.f32.mrb[1].mxu0 }
 0x188   :  { %v225_v8 = vadd.f32 %v224_v7, %v128_v4  ;;  %v415_v4 = vpop.permute.xlu0 %414 }
 0x189   :  { %v244_v9 = vsub.f32 0.0, %v230_v6  ;;  %v420_v6 = vpop.permute.xlu1 %419 }
 0x18a   :  { %v243_v11 = vsub.f32 0.0, %v225_v8  ;;  %v499_v12 = vpop.f32.mrb[2].mxu0 }
 0x18b   :  { %v249_v14 = vmul.f32 1.442695, %v244_v9  ;;  %v240_v15 = vadd.f32 %v499_v12, %v143_v10  ;;  %v234_v16 = vpop.f32.mrb[3].mxu0 }
 0x18c   :  { %v247_v17 = vmul.f32 1.442695, %v243_v11  ;;  %v235_v18 = vadd.f32 %v234_v16, %v138_v13  ;;  %v425_v13 = vpop.permute.xlu0 %424 }
 0x18d   :  { %549 = vpow2.f32 %v249_v14  ;;  %v246_v19 = vsub.f32 0.0, %v240_v15  ;;  %v430_v15 = vpop.permute.xlu1 %429 }
 0x18e   :  { %551 = vpow2.f32 %v247_v17  ;;  %v245_v20 = vsub.f32 0.0, %v235_v18  ;;  %v451_v18 = vlaneseq }
 0x18f   :  { %v253_v21 = vmul.f32 1.442695, %v246_v19 }
 0x190   :  { %v251_v22 = vmul.f32 1.442695, %v245_v20 }
 0x191   :  { %553 = vpow2.f32 %v253_v21  ;;  %v452_v21 = vshrl.u32 %v451_v18, 7 }
 0x192   :  { %555 = vpow2.f32 %v251_v22 }
 0x197   :  { %v550_v23 = vpop.eup %549 }
 0x198   :  { %v552_v24 = vpop.eup %551  ;;  %v256_v25 = vadd.f32 1.0, %v550_v23 }
 0x199   :  { %v255_v26 = vadd.f32 1.0, %v552_v24  ;;  %v453_v24 = vsub.s32 0, %v452_v21 }
 0x19a   :  { %557 = vrcp.f32 %v256_v25 }
 0x19b   :  { %v554_v27 = vpop.eup %553  ;;  %559 = vrcp.f32 %v255_v26  ;;  %v449_v26 = vpop.permute.xlu0 %448 }
 0x19c   :  { %v556_v28 = vpop.eup %555  ;;  %v258_v29 = vadd.f32 1.0, %v554_v27 }
 0x19d   :  { %v257_v30 = vadd.f32 1.0, %v556_v28  ;;  %v454_v28 = vrot.slane %v449_v26, %v453_v24 }
 0x19e   :  { %561 = vrcp.f32 %v258_v29 }
 0x19f   :  { %563 = vrcp.f32 %v257_v30 }
 0x1a4   :  { %v558_v31 = vpop.eup %557 }
 0x1a5   :  { %v560_v32 = vpop.eup %559 }
 0x1a6   :  { %v522_v33 = vpack.c.bf16 %v558_v31, %v560_v32 }
 0x1a8   :  { %v562_v34 = vpop.eup %561  ;;  %523 = vmatprep.subr.bf16.mxu1 %v522_v33 }
 0x1a9   :  { %v564_v35 = vpop.eup %563  ;;  %525 = vmatpush3.bf16.msra.mxu1 %v522_v33 }
 0x1aa   :  { %v526_v36 = vpack.c.bf16 %v562_v34, %v564_v35 }
 0x1ac   :  { %527 = vmatprep.subr.bf16.mxu1 %v526_v36 }
 0x1ad   :  { %529 = vmatpush3.bf16.msra.mxu1 %v526_v36 }
 0x1b0   :  { %509 = vmatmul.mubr.msk.f32.vlgmr.msra.gmra.mrb[0].mxu1 %vm145_vm0, %v264_v37 }
 0x1b1   :  { %511 = vmatprep.mubr.msk.f32.mxu1 %vm145_vm0, %v265_v38 }
 0x1b4   :  { %512 = vmatmul.mubr.msk.f32.gmra.mrb[2].mxu1 %vm145_vm0, %v266_v39 }
 0x283   :  { %v510_v42 = vpop.f32.mrb[0].mxu1 }
 0x284   :  { %v375_v43 = vadd.f32 %v510_v42, %v279_v40  ;;  %v369_v44 = vpop.f32.mrb[1].mxu1 }
 0x285   :  { %v370_v45 = vadd.f32 %v369_v44, %v274_v41 }
 0x286   :  { %v389_v46 = vsub.f32 0.0, %v375_v43 }
 0x287   :  { %v388_v48 = vsub.f32 0.0, %v370_v45  ;;  %v513_v49 = vpop.f32.mrb[2].mxu1 }
 0x288   :  { %v394_v51 = vmul.f32 1.442695, %v389_v46  ;;  %v385_v52 = vadd.f32 %v513_v49, %v289_v47  ;;  %v379_v53 = vpop.f32.mrb[3].mxu1 }
 0x289   :  { %v392_v54 = vmul.f32 1.442695, %v388_v48  ;;  %v380_v55 = vadd.f32 %v379_v53, %v284_v50 }
 0x28a   :  { %565 = vpow2.f32 %v394_v51  ;;  %v391_v56 = vsub.f32 0.0, %v385_v52 }
 0x28b   :  { %567 = vpow2.f32 %v392_v54  ;;  %v390_v57 = vsub.f32 0.0, %v380_v55 }
 0x28c   :  { %v398_v58 = vmul.f32 1.442695, %v391_v56 }
 0x28d   :  { %v396_v59 = vmul.f32 1.442695, %v390_v57 }
 0x28e   :  { %569 = vpow2.f32 %v398_v58 }
 0x28f   :  { %571 = vpow2.f32 %v396_v59 }
 0x294   :  { %v566_v60 = vpop.eup %565 }
 0x295   :  { %v568_v61 = vpop.eup %567  ;;  %v401_v62 = vadd.f32 1.0, %v566_v60 }
 0x296   :  { %v400_v63 = vadd.f32 1.0, %v568_v61 }
 0x297   :  { %573 = vrcp.f32 %v401_v62 }
 0x298   :  { %v570_v0 = vpop.eup %569  ;;  %575 = vrcp.f32 %v400_v63 }
 0x299   :  { %v572_v1 = vpop.eup %571  ;;  %v403_v2 = vadd.f32 1.0, %v570_v0 }
 0x29a   :  { %v402_v3 = vadd.f32 1.0, %v572_v1 }
 0x29b   :  { %577 = vrcp.f32 %v403_v2 }
 0x29c   :  { %579 = vrcp.f32 %v402_v3 }
 0x2a1   :  { %v574_v5 = vpop.eup %573 }
 0x2a2   :  { %v576_v7 = vpop.eup %575  ;;  %v433_v8 = vmul.f32 %v574_v5, %v420_v6 }
 0x2a3   :  { %v432_v9 = vmul.f32 %v576_v7, %v415_v4 }
 0x2a5   :  { %v578_v10 = vpop.eup %577  ;;  %v436_v11 = vadd.f32 %v433_v8, %v432_v9 }
 0x2a6   :  { %v580_v12 = vpop.eup %579  ;;  %v435_v16 = vmul.f32 %v578_v10, %v430_v15 }
 0x2a7   :  { %v434_v14 = vmul.f32 %v580_v12, %v425_v13 }
 0x2a9   :  { %v437_v17 = vadd.f32 %v436_v11, %v434_v14 }
 0x2ab   :  { %v438_v19 = vadd.f32 %v437_v17, %v435_v16 }
 0x2ad   :  { %v439_v20 = vrot.slane %v438_v19, 4 }
 0x2af   :  { %v440_v22 = vadd.f32 %v439_v20, %v438_v19 }
 0x2b1   :  { %v441_v23 = vrot.slane %v440_v22, 2 }
 0x2b3   :  { %v442_v25 = vadd.f32 %v441_v23, %v440_v22 }
 0x2b5   :  { %v443_v27 = vrot.slane %v442_v25, 1 }
 0x2b7   :  { %v444_v29 = vadd.f32 %v443_v27, %v442_v25 }
 0x2b9   :  { %v455_v30 = vadd.f32 %v454_v28, %v444_v29 }
 0x2bb   :  { %456 = vst [vmem:[%s742_s9] sm:$0x1] %v455_v30 }

</bundles_post_ra>
